<compile_context>
chip_gen: v5e
topology: v5e:2x2
jax: 0.10.0
libtpu: 0.0.40
codegen_flags: <defaults>
</compile_context>

<pallas_src>
import jax
import jax.numpy as jnp
import numpy as np
from jax.experimental import pallas as pl
from jax.experimental.pallas import tpu as pltpu

# ---- module constants (from the PyTorch source) -----------------------------
encode_layer = 12
filter_sizes = [2, 2, 2]
hidden_size = 768
n_class = 2
num_filters = 3
n_convs = len(filter_sizes)
num_filter_total = num_filters * n_convs        # 9
k_max = max(filter_sizes)                       # 2
packed_n = k_max * num_filter_total             # 18


# ---- Pallas kernel -----------------------------------------------------------
def textcnn_kernel(x_ref, w_ref, b_conv_ref, w_lin_ref, b_lin_ref, out_ref):
    # x_ref: [block_b*L, H] dense slab (row r = sample r//L, time r%L)
    # w_ref: [H, 18] — lanes 0:9 = kernel-row-0 weights, 9:18 = kernel-row-1,
    #        each half ordered conv-major / filter-minor.
    x = x_ref[...]
    s = jnp.dot(x, w_ref[...], preferred_element_type=jnp.float32)   # [bB*L, 18]
    s = s.reshape(-1, encode_layer, packed_n)                        # [bB, L, 18]

    # Valid conv positions t = 0..L-2: score_t = w0·x_t + w1·x_{t+1}.
    # (Slices are on a tiny f32 [bB, 12, 18] intermediate — negligible cost.)
    s0 = s[:, : encode_layer - 1, :num_filter_total]                 # [bB, 11, 9]
    s1 = s[:, 1:, num_filter_total:]                                 # [bB, 11, 9]
    score = s0 + s1

    # Max over time, then +bias, then ReLU — equivalent to the reference order
    # (bias constant over t; ReLU monotone, so both commute with the time-max).
    pooled = jnp.max(score, axis=1) + b_conv_ref[...]                # [bB, 9]
    h = jnp.maximum(pooled, 0.0)

    out = jnp.dot(h, w_lin_ref[...], preferred_element_type=jnp.float32) + b_lin_ref[...]
    out_ref[...] = out.astype(out_ref.dtype)                         # [bB, n_class]


# ---- wrapper -----------------------------------------------------------------
def _choose_block_b(B):
    # VMEM budget: one f32 x tile is block_b * 12 * 768 * 4 B ~= block_b*36 KiB,
    # and BlockSpec double-buffers it.  256 rows -> ~18.9 MiB double-buffered:
    # inside every generation's limit (with vmem_limit_bytes below) and already
    # in the 85%+-of-HBM-roofline regime.
    budget = 256
    if B <= budget:
        if B >= 16 and B % 16 == 0:
            return B // 2          # >=2 parallel grid steps: feed both v7x TCs
        return B                   # single fat step for small/odd B (1-TC parts)
    return budget


def textcnn_forward(x, w_conv, b_conv, w_lin, b_lin, *, block_b=None):
    """x: [B, L, H] (or [B, 1, L, H]); weights in the original PyTorch layouts.

    w_conv: [n_convs, num_filters, k_max, hidden_size]  (Conv2d weights, in_ch squeezed)
    b_conv: [n_convs, num_filters]
    w_lin:  [n_class, num_filter_total]                 (nn.Linear weight, bias=False)
    b_lin:  [1, n_class] or [n_class]                   (the extra nn.Parameter bias)
    """
    assert all(s == k_max for s in filter_sizes), "packing assumes equal filter sizes"
    if x.ndim == 4:                                   # squeeze the singleton channel
        x = x.reshape(x.shape[0], encode_layer, hidden_size)
    B, L, H = x.shape
    assert (L, H) == (encode_layer, hidden_size)

    if block_b is None:
        block_b = _choose_block_b(B)
    block_b = int(block_b)

    n_steps = pl.cdiv(B, block_b)
    B_pad = n_steps * block_b

    # Dense 2D slab: one contiguous DMA per step, no per-sample sublane padding.
    x2d = x.reshape(B * L, H)
    if B_pad != B:
        x2d = jnp.pad(x2d, ((0, (B_pad - B) * L), (0, 0)))

    # --- one-time host-side weight repacking (constant across the grid) ------
    # column j (within each 9-wide half) = conv_index * num_filters + filter_index
    w0 = jnp.transpose(w_conv[:, :, 0, :].reshape(num_filter_total, H))     # [H, 9]
    w1 = jnp.transpose(w_conv[:, :, 1, :].reshape(num_filter_total, H))     # [H, 9]
    w_pack = jnp.concatenate([w0, w1], axis=1).astype(x.dtype)              # [H, 18]
    b_pack = b_conv.reshape(1, num_filter_total).astype(jnp.float32)        # [1, 9]
    w_lin_t = jnp.transpose(w_lin).astype(jnp.float32)                      # [9, n_class]
    b_lin2 = jnp.asarray(b_lin).reshape(1, n_class).astype(jnp.float32)     # [1, n_class]

    out = pl.pallas_call(
        textcnn_kernel,
        out_shape=jax.ShapeDtypeStruct((B_pad, n_class), jnp.float32),
        grid=(n_steps,),
        in_specs=[
            pl.BlockSpec((block_b * L, H), lambda b: (b, 0)),
            pl.BlockSpec((H, packed_n), lambda b: (0, 0)),
            pl.BlockSpec((1, num_filter_total), lambda b: (0, 0)),
            pl.BlockSpec((num_filter_total, n_class), lambda b: (0, 0)),
            pl.BlockSpec((1, n_class), lambda b: (0, 0)),
        ],
        out_specs=pl.BlockSpec((block_b, n_class), lambda b: (b, 0)),
        compiler_params=pltpu.CompilerParams(
            dimension_semantics=("parallel",),
            # Explicit limit: lifts v5e's 16 MiB default, fits v7x's 64 MiB physical.
            vmem_limit_bytes=48 << 20,
        ),
    )(x2d, w_pack, b_pack, w_lin_t, b_lin2)
    return out[:B]


# ---- pure-JAX reference (original, un-packed layouts) --------------------------
def textcnn_ref(x, w_conv, b_conv, w_lin, b_lin):
    pooled = []
    for i, size in enumerate(filter_sizes):
        T = encode_layer - size + 1
        s = jnp.zeros((x.shape[0], T, num_filters), jnp.float32)
        for k in range(size):
            s = s + jnp.einsum("bth,fh->btf", x[:, k:k + T, :], w_conv[i, :, k, :])
        s = s + b_conv[i][None, None, :]
        pooled.append(jnp.max(jax.nn.relu(s), axis=1))
    h = jnp.concatenate(pooled, axis=-1)
    return h @ w_lin.T + jnp.asarray(b_lin).reshape(-1)


if __name__ == "__main__":
    key = jax.random.PRNGKey(0)
    kx, kw, kb, kl = jax.random.split(key, 4)

    B = 16  # small batch; L=12, H=768 are fixed by the module definition
    x = jax.random.normal(kx, (B, encode_layer, hidden_size), jnp.float32)

    # deterministic synthetic parameters (shapes from TextCNN.__init__)
    w_conv = 0.02 * jax.random.normal(
        kw, (n_convs, num_filters, k_max, hidden_size), jnp.float32)
    b_conv = 0.02 * jax.random.normal(kb, (n_convs, num_filters), jnp.float32)
    w_lin = 0.1 * jax.random.normal(kl, (n_class, num_filter_total), jnp.float32)
    b_lin = jnp.ones((1, n_class), jnp.float32)   # matches torch.ones([n_class])

    out = textcnn_forward(x, w_conv, b_conv, w_lin, b_lin)
    jax.block_until_ready(out)

    ref = textcnn_ref(x, w_conv, b_conv, w_lin, b_lin)
    assert out.shape == (B, n_class)
    np.testing.assert_allclose(np.asarray(out), np.asarray(ref), rtol=1e-4, atol=1e-4)
    print("KERNEL_OK")
</pallas_src>

<mosaic_0001>
module attributes {stable_mosaic.version = 11 : i64} {
  func.func @textcnn_kernel(%arg0: i32, %arg1: memref<96x768xf32, #tpu.memory_space<vmem>>, %arg2: memref<768x18xf32, #tpu.memory_space<vmem>>, %arg3: memref<1x9xf32, #tpu.memory_space<vmem>>, %arg4: memref<9x2xf32, #tpu.memory_space<vmem>>, %arg5: memref<1x2xf32, #tpu.memory_space<vmem>>, %arg6: memref<8x2xf32, #tpu.memory_space<vmem>>) attributes {dimension_semantics = [#tpu.dimension_semantics<parallel>], iteration_bounds = array<i64: 2>, scalar_prefetch = 0 : i64, scratch_operands = 0 : i64, tpu.core_type = #tpu.core_type<tc>, window_params = [{transform_indices = @transform_0, window_bounds = array<i64: 96, 768>}, {pipeline_mode = #tpu.pipeline_mode<synchronous>, transform_indices = @transform_1, window_bounds = array<i64: 768, 18>}, {pipeline_mode = #tpu.pipeline_mode<synchronous>, transform_indices = @transform_2, window_bounds = array<i64: 1, 9>}, {pipeline_mode = #tpu.pipeline_mode<synchronous>, transform_indices = @transform_3, window_bounds = array<i64: 9, 2>}, {pipeline_mode = #tpu.pipeline_mode<synchronous>, transform_indices = @transform_4, window_bounds = array<i64: 1, 2>}, {transform_indices = @transform_5, window_bounds = array<i64: 8, 2>}]} {
    %c0 = arith.constant 0 : index
    %c0_0 = arith.constant 0 : index
    %0 = vector.load %arg1[%c0, %c0_0] : memref<96x768xf32, #tpu.memory_space<vmem>>, vector<96x768xf32>
    %c0_1 = arith.constant 0 : index
    %c0_2 = arith.constant 0 : index
    %1 = vector.load %arg2[%c0_1, %c0_2] : memref<768x18xf32, #tpu.memory_space<vmem>>, vector<768x18xf32>
    %cst = arith.constant dense<0.000000e+00> : vector<96x18xf32>
    %2 = tpu.matmul %0, %1, %cst {dimension_numbers = #tpu.dot_dimension_numbers<[1], [0], [0], [1], [0, 0, 1, 1], [], []>} : vector<96x768xf32>, vector<768x18xf32>, vector<96x18xf32> -> vector<96x18xf32>
    %3 = vector.shape_cast %2 : vector<96x18xf32> to vector<8x12x18xf32>
    %4 = vector.extract_strided_slice %3 {offsets = [0, 0, 0], sizes = [8, 11, 9], strides = [1, 1, 1]} : vector<8x12x18xf32> to vector<8x11x9xf32>
    %5 = vector.extract_strided_slice %3 {offsets = [0, 1, 9], sizes = [8, 11, 9], strides = [1, 1, 1]} : vector<8x12x18xf32> to vector<8x11x9xf32>
    %6 = arith.addf %4, %5 : vector<8x11x9xf32>
    %cst_3 = arith.constant dense<0xFF800000> : vector<8x9xf32>
    %7 = vector.multi_reduction <maximumf>, %6, %cst_3 [1] : vector<8x11x9xf32> to vector<8x9xf32>
    %c0_4 = arith.constant 0 : index
    %c0_5 = arith.constant 0 : index
    %8 = vector.load %arg3[%c0_4, %c0_5] : memref<1x9xf32, #tpu.memory_space<vmem>>, vector<1x9xf32>
    %9 = vector.broadcast %8 : vector<1x9xf32> to vector<8x9xf32>
    %10 = arith.addf %7, %9 : vector<8x9xf32>
    %cst_6 = arith.constant 0.000000e+00 : f32
    %11 = vector.broadcast %cst_6 : f32 to vector<8x9xf32>
    %12 = arith.maximumf %10, %11 : vector<8x9xf32>
    %c0_7 = arith.constant 0 : index
    %c0_8 = arith.constant 0 : index
    %13 = vector.load %arg4[%c0_7, %c0_8] : memref<9x2xf32, #tpu.memory_space<vmem>>, vector<9x2xf32>
    %cst_9 = arith.constant dense<0.000000e+00> : vector<8x2xf32>
    %14 = tpu.matmul %12, %13, %cst_9 {dimension_numbers = #tpu.dot_dimension_numbers<[1], [0], [0], [1], [0, 0, 1, 1], [], []>} : vector<8x9xf32>, vector<9x2xf32>, vector<8x2xf32> -> vector<8x2xf32>
    %c0_10 = arith.constant 0 : index
    %c0_11 = arith.constant 0 : index
    %15 = vector.load %arg5[%c0_10, %c0_11] : memref<1x2xf32, #tpu.memory_space<vmem>>, vector<1x2xf32>
    %16 = vector.broadcast %15 : vector<1x2xf32> to vector<8x2xf32>
    %17 = arith.addf %14, %16 : vector<8x2xf32>
    %c0_12 = arith.constant 0 : index
    %c0_13 = arith.constant 0 : index
    %18 = vector.load %arg6[%c0_12, %c0_13] : memref<8x2xf32, #tpu.memory_space<vmem>>, vector<8x2xf32>
    tpu.vector_store %arg6[%c0_12, %c0_13], %17 {strides = array<i32>} : memref<8x2xf32, #tpu.memory_space<vmem>>, vector<8x2xf32>,
    return
  }
  func.func @transform_0(%arg0: i32) -> (i32, i32) {
    %c0_i32 = arith.constant 0 : i32
    %c0_i32_0 = arith.constant 0 : i32
    return %arg0, %c0_i32 : i32, i32
  }
  func.func @transform_1(%arg0: i32) -> (i32, i32) {
    %c0_i32 = arith.constant 0 : i32
    %c0_i32_0 = arith.constant 0 : i32
    %c0_i32_1 = arith.constant 0 : i32
    return %c0_i32, %c0_i32_0 : i32, i32
  }
  func.func @transform_2(%arg0: i32) -> (i32, i32) {
    %c0_i32 = arith.constant 0 : i32
    %c0_i32_0 = arith.constant 0 : i32
    %c0_i32_1 = arith.constant 0 : i32
    return %c0_i32, %c0_i32_0 : i32, i32
  }
  func.func @transform_3(%arg0: i32) -> (i32, i32) {
    %c0_i32 = arith.constant 0 : i32
    %c0_i32_0 = arith.constant 0 : i32
    %c0_i32_1 = arith.constant 0 : i32
    return %c0_i32, %c0_i32_0 : i32, i32
  }
  func.func @transform_4(%arg0: i32) -> (i32, i32) {
    %c0_i32 = arith.constant 0 : i32
    %c0_i32_0 = arith.constant 0 : i32
    %c0_i32_1 = arith.constant 0 : i32
    return %c0_i32, %c0_i32_0 : i32, i32
  }
  func.func @transform_5(%arg0: i32) -> (i32, i32) {
    %c0_i32 = arith.constant 0 : i32
    %c0_i32_0 = arith.constant 0 : i32
    return %arg0, %c0_i32 : i32, i32
  }
}

</mosaic_0001>

<bundles_post_ra>
// kernel: tpu_custom_call.1
= control target key start
LH: loop header
LB: loop body
LE: loop exit
PB: predicated region body
PF: predicated region fallthrough
CT: control target
= control target key end

     0   :  { %10 = vsyncpa [#allocation3], 0  ;;  %s2125_s0 = inlined_call_operand.hbm [shape: f32[192,768], index: 0, kind: input, shape index: {}]   ;;  %s2126_s1 = inlined_call_operand.vmem [shape: f32[768,18], index: 1, kind: input, shape index: {}]   ;;  %s2127_s2 = inlined_call_operand.vmem [shape: f32[1,9], index: 2, kind: input, shape index: {}]   ;;  %s2128_s3 = inlined_call_operand.vmem [shape: f32[9,2], index: 3, kind: input, shape index: {}]   ;;  %s2129_s4 = inlined_call_operand.vmem [shape: f32[1,2], index: 4, kind: input, shape index: {}]   ;;  %s2130_s5 = inlined_call_operand.vmem [shape: f32[16,2], index: 5, kind: output, shape index: {}]  }
   0x1   :  { %12 = vsyncpa [#allocation3 + $0x1], 0  ;;  %s1436_s18 = smov 0   ;;  %s1438_s19 = smov 0  }
   0x2   :  { %s1440_s20 = smov 0   ;;  %s1442_s21 = smov 0  }
   0x3 LB: > { %s1455_s22 = sadd.s32 4294967295, %s1401_s21   ;;  %s1458_s23 = sadd.s32 1, %s1401_s21   ;;  %s1401_s21 = sphi %s1442_s21, %s2138_s21   ;;  %s1397_s20 = sphi %s1440_s20, %s2137_s20   ;;  %s1393_s19 = sphi %s1438_s19, %s2136_s19   ;;  %s1389_s18 = sphi %s1436_s18, %s2135_s18  }
   0x4   : > { %s22_s24 = ssub.s32 %s1401_s21, %s1458_s23  ;;  %s25_s25 = sadd.s32 1, %s1397_s20 }
   0x5   : > { %p23_p0 = scmp.eq.s32.totalorder %s22_s24, 0  ;;  %p32_p1 = scmp.ne.s32.totalorder %s1397_s20, %s1393_s19 }
   0x6   : > { %p33_p2 = scmp.eq.s32.totalorder %s1401_s21, 0  ;;  %p38_p3 = scmp.ne.s32.totalorder %s1393_s19, %s1389_s18 }
   0x7   : > { %s1468_s26 = scalar_select %p23_p0, %s1397_s20, %s25_s25  }
   0x8   : > { %p34_p4 = por %p33_p2, %p32_p1  ;;  %p39_p5 = scmp.eq.s32.totalorder %s1455_s22, 0 }
   0x9   : > { %p1298_p6 = scmp.lt.s32.totalorder %s1401_s21, 2  ;;  %s184_s28 = sand.u32 1, %s1397_s20  }
   0xa   : > { %p1472_p7 = por %p39_p5, %p38_p3  ;;  %s1289_s29 = smul.u32 576, %s184_s28 }
   0xb   : > { %p1477_p8 = pnand %p1298_p6, %p34_p4  ;;  %s1299_s6 = smul.u32 576, %s1401_s21 }
   0xc   : > { %s188_s7 = scalar_lea.vmem [#allocation2], %s1289_s29  ;;  %s185_s13 = scalar_lea.sflag [#allocation3], %s184_s28 }
   0xd   : > { %s197_s8 = sshll.u32 %s188_s7, 4  ;;  %s194_s11 = scalar_lea.hbm %s2125_s0, %s1299_s6  ;;  %s198_s8 = int_to_ptr.vmem [resolvable:$true] %s197_s8 }
   0xe   : > { %s195_s12 = sshll.u32 %s194_s11, 4  ;;  %p1341_p10 = pneg %p1477_p8  ;;  %s196_s12 = int_to_ptr.hbm [resolvable:$true] %s195_s12 }
   0xf   : > { %s1337_s14 = sshra.s32 %s196_s12, 4  ;;  %s1344_s18 = scalar_lea.hbm %s2125_s0, 1152  ;;  %s1338_s14 = int_to_ptr.hbm [resolvable:$true] %s1337_s14 }
  0x10   : > { %s1339_s15 = scalar_lea.hbm %s1338_s14, 576  ;;  %p1345_p13 = scmp.lt.s32.totalorder %s1338_s14, %s2125_s0 }
  0x11   : > { %p1340_p9 = scmp.ne.s32.totalorder %s1338_s14, %s1339_s15  ;;  %p1346_p0 = scmp.lt.s32.totalorder %s1344_s18, %s1339_s15 }
  0x13   : > { %p1342_p11 = pnand %p1341_p10, %p1340_p9  ;;  %p1347_p1 = por %p1346_p0, %p1345_p13 }
  0x15   : > { %p1343_p12 = pneg %p1342_p11 }
  0x17   : > { %p1348_p2 = pnand %p1347_p1, %p1343_p12 }
  0x19   : > { %1351 = shalt.err (!%p1348_p2)
}
  0x1a   : > { %s1403_s28 = smov 768   ;;  %s1404_s29 = smov 48  }
  0x1b   : > { %1297 = dma.hbm_to_vmem [thread:$0]  (!%p1477_p8), %s196_s12, 9216, %s198_s8, %s185_s13, %s1403_s28, %s1403_s28, %s1404_s29  }
  0x1c   : > { %p1243_p3 = scmp.ge.s32.totalorder %s1401_s21, 1  ;;  %p205_p4 = scmp.lt.s32.totalorder %s1401_s21, 3 }
  0x1e   : > { %p206_p5 = pnand %p1243_p3, %p205_p4 }
  0x1f   : > { %s211_s6 = sand.u32 (!%p206_p5), 1, %s1393_s19  }
  0x20   : > { %209 = sbr.rel (%p206_p5) target bundleno = 632 (0x278), region = 40  ;;  %s212_s9 = scalar_lea.sflag (!%p206_p5), [#allocation3], %s211_s6 }
  0x21   : > { %s1291_s7 = smul.u32 (!%p206_p5), 576, %s211_s6 }
  0x23   : > { %s1498_s10 = scalar_lea.vmem (!%p206_p5), [#allocation2], %s1291_s7 }
  0x25   : > { %1384 = dma.done.wait (%p1472_p7), %s212_s9, 9216  }
  0x26   : > { %1386 = vsyncadd (%p1472_p7), %s212_s9, 4294958080  ;;  %v334_v0 = vld [vmem:[%s2126_s1 + $0x78] sm:$0xff]  ;;  %v333_v2 = vld [vmem:[%s2126_s1 + $0x70] sm:$0xff]  ;;  %vm769_vm0 = vcmask 1042432   ;;  %vm770_vm1 = vcmask 1046532   ;;  %vm1148_vm3 = vcmask 1040384  }
  0x27   : > { %v350_v1 = vld [vmem:[%s2126_s1 + $0xf8] sm:$0xff]  ;;  %415 = vmatpush.msra.mxu0 %v334_v0  ;;  %v349_v3 = vld [vmem:[%s2126_s1 + $0xf0] sm:$0xff]  ;;  %1257 = vmatpush.msra.mxu3 %v334_v0  ;;  %v332_v4 = vld [vmem:[%s2126_s1 + $0x68] sm:$0xff]  ;;  %vm1017_vm4 = vcmask 72704   ;;  %vm1019_vm5 = vcmask 67584   ;;  %vm1126_vm6 = vcmask 1041409  }
  0x28   : > { %468 = vmatpush.msra.mxu1 %v350_v1  ;;  %1273 = vmatpush.msra.mxu2 %v350_v1  ;;  %v348_v5 = vld [vmem:[%s2126_s1 + $0xe8] sm:$0xff]  ;;  %v331_v6 = vld [vmem:[%s2126_s1 + $0x60] sm:$0xff]  ;;  %v330_v8 = vld [vmem:[%s2126_s1 + $0x58] sm:$0xff]  ;;  %vm1129_vm7 = vcmask 1042434   ;;  %vm1132_vm8 = vcmask 1043459   ;;  %vm1135_vm9 = vcmask 1044484  }
  0x29   : > { %416 = vmatpush.msra.mxu0 %v333_v2  ;;  %1258 = vmatpush.msra.mxu3 %v333_v2  ;;  %v347_v7 = vld [vmem:[%s2126_s1 + $0xe0] sm:$0xff]  ;;  %v346_v9 = vld [vmem:[%s2126_s1 + $0xd8] sm:$0xff]  ;;  %v329_v10 = vld [vmem:[%s2126_s1 + $0x50] sm:$0xff]  ;;  %vm1138_vm10 = vcmask 1045509   ;;  %vm1141_vm11 = vcmask 1046534   ;;  %vm1144_vm12 = vcmask 1047559  }
  0x2a   : > { %469 = vmatpush.msra.mxu1 %v349_v3  ;;  %1274 = vmatpush.msra.mxu2 %v349_v3  ;;  %v345_v11 = vld [vmem:[%s2126_s1 + $0xd0] sm:$0xff]  ;;  %v328_v12 = vld [vmem:[%s2126_s1 + $0x48] sm:$0xff]  ;;  %v327_v14 = vld [vmem:[%s2126_s1 + $0x40] sm:$0xff]  ;;  %p243_p6 = scmp.lt.s32.totalorder %s1455_s22, 1  ;;  %vm1172_vm13 = vcmask 15360  }
  0x2b   : > { %417 = vmatpush.msra.mxu0 %v332_v4  ;;  %1259 = vmatpush.msra.mxu3 %v332_v4  ;;  %v344_v13 = vld [vmem:[%s2126_s1 + $0xc8] sm:$0xff]  ;;  %v343_v15 = vld [vmem:[%s2126_s1 + $0xc0] sm:$0xff]  ;;  %v326_v16 = vld [vmem:[%s2126_s1 + $0x38] sm:$0xff] }
  0x2c   : > { %470 = vmatpush.msra.mxu1 %v348_v5  ;;  %1275 = vmatpush.msra.mxu2 %v348_v5  ;;  %v342_v17 = vld [vmem:[%s2126_s1 + $0xb8] sm:$0xff]  ;;  %v325_v18 = vld [vmem:[%s2126_s1 + $0x30] sm:$0xff]  ;;  %v324_v20 = vld [vmem:[%s2126_s1 + $0x28] sm:$0xff]  ;;  %s2140_s22 = smov (!%p243_p6, %s1455_s22), 1 }
  0x2d   : > { %418 = vmatpush.msra.mxu0 %v331_v6  ;;  %1260 = vmatpush.msra.mxu3 %v331_v6  ;;  %v341_v19 = vld [vmem:[%s2126_s1 + $0xb0] sm:$0xff]  ;;  %v340_v21 = vld [vmem:[%s2126_s1 + $0xa8] sm:$0xff]  ;;  %v323_v22 = vld [vmem:[%s2126_s1 + $0x20] sm:$0xff]  ;;  %s1244_s27 = sshll.u32 %s2140_s22, 3 }
  0x2e   : > { %471 = vmatpush.msra.mxu1 %v347_v7  ;;  %1276 = vmatpush.msra.mxu2 %v347_v7  ;;  %v339_v23 = vld [vmem:[%s2126_s1 + $0xa0] sm:$0xff]  ;;  %v322_v24 = vld [vmem:[%s2126_s1 + $0x18] sm:$0xff]  ;;  %v321_v26 = vld [vmem:[%s2126_s1 + $0x10] sm:$0xff]  ;;  %s246_s25 = scalar_lea.vmem %s2130_s5, %s1244_s27 }
  0x2f   : > { %419 = vmatpush.msra.mxu0 %v330_v8  ;;  %1261 = vmatpush.msra.mxu3 %v330_v8  ;;  %v338_v25 = vld [vmem:[%s2126_s1 + $0x98] sm:$0xff]  ;;  %v337_v27 = vld [vmem:[%s2126_s1 + $0x90] sm:$0xff]  ;;  %v320_v28 = vld [vmem:[%s2126_s1 + $0x8] sm:$0xff] }
  0x30   : > { %472 = vmatpush.msra.mxu1 %v346_v9  ;;  %1277 = vmatpush.msra.mxu2 %v346_v9  ;;  %v336_v29 = vld [vmem:[%s2126_s1 + $0x88] sm:$0xff]  ;;  %v319_v30 = vld [vmem:[%s2126_s1] sm:$0xff]  ;;  %v248_v33 = vld [vmem:[%s1498_s10 + $0x8] sm:$0xff] }
  0x31   : > { %420 = vmatpush.msra.mxu0 %v329_v10  ;;  %1262 = vmatpush.msra.mxu3 %v329_v10  ;;  %v335_v31 = vld [vmem:[%s2126_s1 + $0x80] sm:$0xff]  ;;  %v247_v32 = vld [vmem:[%s1498_s10] sm:$0xff]  ;;  %v398_v35 = vld [vmem:[%s2126_s1 + $0x278] sm:$0xff] }
  0x32   : > { %473 = vmatpush.msra.mxu1 %v345_v11  ;;  %1278 = vmatpush.msra.mxu2 %v345_v11  ;;  %v290_v34 = vld [vmem:[%s1498_s10 + $0x158] sm:$0xff]  ;;  %v289_v36 = vld [vmem:[%s1498_s10 + $0x150] sm:$0xff]  ;;  %v397_v38 = vld [vmem:[%s2126_s1 + $0x270] sm:$0xff] }
  0x33   : > { %421 = vmatpush.msra.mxu0 %v328_v12  ;;  %1263 = vmatpush.msra.mxu3 %v328_v12  ;;  %v414_v37 = vld [vmem:[%s2126_s1 + $0x2f8] sm:$0xff]  ;;  %v413_v40 = vld [vmem:[%s2126_s1 + $0x2f0] sm:$0xff]  ;;  %v396_v42 = vld [vmem:[%s2126_s1 + $0x268] sm:$0xff] }
  0x34   : > { %474 = vmatpush.msra.mxu1 %v344_v13  ;;  %1279 = vmatpush.msra.mxu2 %v344_v13  ;;  %v366_v39 = vld [vmem:[%s2126_s1 + $0x178] sm:$0xff]  ;;  %v365_v43 = vld [vmem:[%s2126_s1 + $0x170] sm:$0xff]  ;;  %v412_v44 = vld [vmem:[%s2126_s1 + $0x2e8] sm:$0xff] }
  0x35   : > { %422 = vmatpush.msra.mxu0 %v327_v14  ;;  %1264 = vmatpush.msra.mxu3 %v327_v14  ;;  %v382_v41 = vld [vmem:[%s2126_s1 + $0x1f8] sm:$0xff]  ;;  %v381_v45 = vld [vmem:[%s2126_s1 + $0x1f0] sm:$0xff]  ;;  %v364_v47 = vld [vmem:[%s2126_s1 + $0x168] sm:$0xff] }
  0x36   : > { %475 = vmatpush.msra.mxu1 %v343_v15  ;;  %1280 = vmatpush.msra.mxu2 %v343_v15  ;;  %v253_v46 = vld [vmem:[%s1498_s10 + $0x30] sm:$0xff]  ;;  %v254_v48 = vld [vmem:[%s1498_s10 + $0x38] sm:$0xff]  ;;  %v296_v49 = vld [vmem:[%s1498_s10 + $0x188] sm:$0xff] }
  0x37   : > { %423 = vmatpush.msra.mxu0 %v326_v16  ;;  %1265 = vmatpush.msra.mxu3 %v326_v16  ;;  %v395_v50 = vld [vmem:[%s2126_s1 + $0x260] sm:$0xff]  ;;  %v380_v51 = vld [vmem:[%s2126_s1 + $0x1e8] sm:$0xff]  ;;  %v394_v55 = vld [vmem:[%s2126_s1 + $0x258] sm:$0xff] }
  0x38   : > { %476 = vmatpush.msra.mxu1 %v342_v17  ;;  %1281 = vmatpush.msra.mxu2 %v342_v17  ;;  %v295_v52 = vld [vmem:[%s1498_s10 + $0x180] sm:$0xff]  ;;  %v411_v53 = vld [vmem:[%s2126_s1 + $0x2e0] sm:$0xff]  ;;  %v410_v57 = vld [vmem:[%s2126_s1 + $0x2d8] sm:$0xff] }
  0x39   : > { %424 = vmatpush.msra.mxu0 %v325_v18  ;;  %1266 = vmatpush.msra.mxu3 %v325_v18  ;;  %v363_v54 = vld [vmem:[%s2126_s1 + $0x160] sm:$0xff]  ;;  %v362_v58 = vld [vmem:[%s2126_s1 + $0x158] sm:$0xff]  ;;  %v393_v59 = vld [vmem:[%s2126_s1 + $0x250] sm:$0xff] }
  0x3a   : > { %477 = vmatpush.msra.mxu1 %v341_v19  ;;  %1282 = vmatpush.msra.mxu2 %v341_v19  ;;  %v379_v56 = vld [vmem:[%s2126_s1 + $0x1e0] sm:$0xff]  ;;  %v378_v60 = vld [vmem:[%s2126_s1 + $0x1d8] sm:$0xff]  ;;  %v409_v61 = vld [vmem:[%s2126_s1 + $0x2d0] sm:$0xff] }
  0x3b   : > { %425 = vmatpush.msra.mxu0 %v324_v20  ;;  %1267 = vmatpush.msra.mxu3 %v324_v20  ;;  %v259_v62 = vld [vmem:[%s1498_s10 + $0x60] sm:$0xff]  ;;  %v361_v63 = vld [vmem:[%s2126_s1 + $0x150] sm:$0xff]  ;;  %v302_v1 = vld [vmem:[%s1498_s10 + $0x1b8] sm:$0xff] }
  0x3c   : > { %478 = vmatpush.msra.mxu1 %v340_v21  ;;  %1283 = vmatpush.msra.mxu2 %v340_v21  ;;  %v260_v0 = vld [vmem:[%s1498_s10 + $0x68] sm:$0xff]  ;;  %v360_v2 = vld [vmem:[%s2126_s1 + $0x148] sm:$0xff]  ;;  %v301_v4 = vld [vmem:[%s1498_s10 + $0x1b0] sm:$0xff] }
  0x3d   : > { %426 = vmatpush.msra.mxu0 %v323_v22  ;;  %1268 = vmatpush.msra.mxu3 %v323_v22  ;;  %v377_v3 = vld [vmem:[%s2126_s1 + $0x1d0] sm:$0xff]  ;;  %v392_v5 = vld [vmem:[%s2126_s1 + $0x248] sm:$0xff]  ;;  %v359_v6 = vld [vmem:[%s2126_s1 + $0x140] sm:$0xff] }
  0x3e   : > { %479 = vmatpush.msra.mxu1 %v339_v23  ;;  %1284 = vmatpush.msra.mxu2 %v339_v23  ;;  %v376_v7 = vld [vmem:[%s2126_s1 + $0x1c8] sm:$0xff]  ;;  %v391_v9 = vld [vmem:[%s2126_s1 + $0x240] sm:$0xff]  ;;  %v358_v10 = vld [vmem:[%s2126_s1 + $0x138] sm:$0xff] }
  0x3f   : > { %427 = vmatpush.msra.mxu0 %v322_v24  ;;  %1269 = vmatpush.msra.mxu3 %v322_v24  ;;  %v408_v8 = vld [vmem:[%s2126_s1 + $0x2c8] sm:$0xff]  ;;  %v375_v11 = vld [vmem:[%s2126_s1 + $0x1c0] sm:$0xff]  ;;  %v390_v13 = vld [vmem:[%s2126_s1 + $0x238] sm:$0xff] }
  0x40   : > { %480 = vmatpush.msra.mxu1 %v338_v25  ;;  %1285 = vmatpush.msra.mxu2 %v338_v25  ;;  %v407_v12 = vld [vmem:[%s2126_s1 + $0x2c0] sm:$0xff]  ;;  %v265_v14 = vld [vmem:[%s1498_s10 + $0x90] sm:$0xff]  ;;  %v357_v15 = vld [vmem:[%s2126_s1 + $0x130] sm:$0xff] }
  0x41   : > { %428 = vmatpush.msra.mxu0 %v321_v26  ;;  %1270 = vmatpush.msra.mxu3 %v321_v26  ;;  %v266_v16 = vld [vmem:[%s1498_s10 + $0x98] sm:$0xff]  ;;  %v308_v17 = vld [vmem:[%s1498_s10 + $0x1e8] sm:$0xff]  ;;  %v374_v18 = vld [vmem:[%s2126_s1 + $0x1b8] sm:$0xff] }
  0x42   : > { %481 = vmatpush.msra.mxu1 %v337_v27  ;;  %1286 = vmatpush.msra.mxu2 %v337_v27  ;;  %v356_v19 = vld [vmem:[%s2126_s1 + $0x128] sm:$0xff]  ;;  %v406_v21 = vld [vmem:[%s2126_s1 + $0x2b8] sm:$0xff]  ;;  %v373_v22 = vld [vmem:[%s2126_s1 + $0x1b0] sm:$0xff] }
  0x43   : > { %429 = vmatpush.msra.mxu0 %v320_v28  ;;  %1271 = vmatpush.msra.mxu3 %v320_v28  ;;  %v307_v20 = vld [vmem:[%s1498_s10 + $0x1e0] sm:$0xff]  ;;  %v355_v23 = vld [vmem:[%s2126_s1 + $0x120] sm:$0xff]  ;;  %v389_v24 = vld [vmem:[%s2126_s1 + $0x230] sm:$0xff] }
  0x44   : > { %482 = vmatpush.msra.mxu1 %v336_v29  ;;  %1287 = vmatpush.msra.mxu2 %v336_v29  ;;  %v405_v25 = vld [vmem:[%s2126_s1 + $0x2b0] sm:$0xff]  ;;  %v372_v26 = vld [vmem:[%s2126_s1 + $0x1a8] sm:$0xff]  ;;  %v354_v27 = vld [vmem:[%s2126_s1 + $0x118] sm:$0xff] }
  0x45   : > { %430 = vmatpush.msra.mxu0 %v319_v30  ;;  %1272 = vmatpush.msra.mxu3 %v319_v30  ;;  %v388_v28 = vld [vmem:[%s2126_s1 + $0x228] sm:$0xff]  ;;  %vm1889_vm2 = vmor %vm769_vm0, %vm770_vm1 }
  0x46   : > { %483 = vmatpush.msra.mxu1 %v335_v31  ;;  %1288 = vmatpush.msra.mxu2 %v335_v31  ;;  %v404_v29 = vld [vmem:[%s2126_s1 + $0x2a8] sm:$0xff]  ;;  %v371_v31 = vld [vmem:[%s2126_s1 + $0x1a0] sm:$0xff] }
  0x47   : > { %431 = vmatmul.f32.vlgmr.msra.gmra.mxu0 %v247_v32  ;;  %484 = vmatmul.f32.vlgmr.msra.gmra.mxu1 %v248_v33  ;;  %v271_v30 = vld [vmem:[%s1498_s10 + $0xc0] sm:$0xff]  ;;  %v272_v32 = vld [vmem:[%s1498_s10 + $0xc8] sm:$0xff]  ;;  %v314_v33 = vld [vmem:[%s1498_s10 + $0x218] sm:$0xff] }
  0x48   : > { %505 = vmatmul.f32.vlgmr.msra.gmra.mxu2 %v290_v34  ;;  %627 = vmatpush.msrb.mxu0 %v398_v35  ;;  %v353_v34 = vld [vmem:[%s2126_s1 + $0x110] sm:$0xff]  ;;  %v370_v35 = vld [vmem:[%s2126_s1 + $0x198] sm:$0xff] }
  0x49   : > { %452 = vmatmul.f32.vlgmr.msra.gmra.mxu3 %v289_v36  ;;  %680 = vmatpush.msrb.mxu1 %v414_v37  ;;  %v313_v36 = vld [vmem:[%s1498_s10 + $0x210] sm:$0xff]  ;;  %v387_v37 = vld [vmem:[%s2126_s1 + $0x220] sm:$0xff] }
  0x4a   : > { %628 = vmatpush.msrb.mxu0 %v397_v38  ;;  %521 = vmatpush.msrb.mxu2 %v366_v39  ;;  %v352_v38 = vld [vmem:[%s2126_s1 + $0x108] sm:$0xff]  ;;  %v369_v39 = vld [vmem:[%s2126_s1 + $0x190] sm:$0xff] }
  0x4b   : > { %681 = vmatpush.msrb.mxu1 %v413_v40  ;;  %574 = vmatpush.msrb.mxu3 %v382_v41  ;;  %v403_v40 = vld [vmem:[%s2126_s1 + $0x2a0] sm:$0xff]  ;;  %v386_v41 = vld [vmem:[%s2126_s1 + $0x218] sm:$0xff] }
  0x4c   : > { %629 = vmatpush.msrb.mxu0 %v396_v42  ;;  %522 = vmatpush.msrb.mxu2 %v365_v43  ;;  %v351_v42 = vld [vmem:[%s2126_s1 + $0x100] sm:$0xff]  ;;  %v368_v43 = vld [vmem:[%s2126_s1 + $0x188] sm:$0xff] }
  0x4d   : > { %682 = vmatpush.msrb.mxu1 %v412_v44  ;;  %575 = vmatpush.msrb.mxu3 %v381_v45  ;;  %v402_v44 = vld [vmem:[%s2126_s1 + $0x298] sm:$0xff]  ;;  %v385_v45 = vld [vmem:[%s2126_s1 + $0x210] sm:$0xff] }
  0x4e   : > { %523 = vmatpush.msrb.mxu2 %v364_v47  ;;  %630 = vmatpush.msrb.mxu0 %v395_v50  ;;  %v367_v47 = vld [vmem:[%s2126_s1 + $0x180] sm:$0xff]  ;;  %v401_v50 = vld [vmem:[%s2126_s1 + $0x290] sm:$0xff] }
  0x4f   : > { %434 = vmatmul.f32.gmra.mxu0 %v253_v46  ;;  %487 = vmatmul.f32.gmra.mxu1 %v254_v48  ;;  %v277_v46 = vld [vmem:[%s1498_s10 + $0xf0] sm:$0xff]  ;;  %v278_v48 = vld [vmem:[%s1498_s10 + $0xf8] sm:$0xff] }
  0x50   : > { %508 = vmatmul.f32.gmra.mxu2 %v296_v49  ;;  %576 = vmatpush.msrb.mxu3 %v380_v51  ;;  %v249_v49 = vld [vmem:[%s1498_s10 + $0x10] sm:$0xff]  ;;  %v384_v51 = vld [vmem:[%s2126_s1 + $0x208] sm:$0xff] }
  0x51   : > { %455 = vmatmul.f32.gmra.mxu3 %v295_v52  ;;  %683 = vmatpush.msrb.mxu1 %v411_v53  ;;  %v250_v52 = vld [vmem:[%s1498_s10 + $0x18] sm:$0xff]  ;;  %v400_v53 = vld [vmem:[%s2126_s1 + $0x288] sm:$0xff] }
  0x52   : > { %524 = vmatpush.msrb.mxu2 %v363_v54  ;;  %631 = vmatpush.msrb.mxu0 %v394_v55  ;;  %v383_v54 = vld [vmem:[%s2126_s1 + $0x200] sm:$0xff] }
  0x53   : > { %577 = vmatpush.msrb.mxu3 %v379_v56  ;;  %684 = vmatpush.msrb.mxu1 %v410_v57  ;;  %v399_v55 = vld [vmem:[%s2126_s1 + $0x280] sm:$0xff]  ;;  %v283_v56 = vld [vmem:[%s1498_s10 + $0x120] sm:$0xff]  ;;  %v284_v57 = vld [vmem:[%s1498_s10 + $0x128] sm:$0xff] }
  0x54   : > { %525 = vmatpush.msrb.mxu2 %v362_v58  ;;  %632 = vmatpush.msrb.mxu0 %v393_v59  ;;  %v255_v58 = vld [vmem:[%s1498_s10 + $0x40] sm:$0xff]  ;;  %v256_v59 = vld [vmem:[%s1498_s10 + $0x48] sm:$0xff] }
  0x55   : > { %578 = vmatpush.msrb.mxu3 %v378_v60  ;;  %685 = vmatpush.msrb.mxu1 %v409_v61  ;;  %v251_v60 = vld [vmem:[%s1498_s10 + $0x20] sm:$0xff]  ;;  %v261_v61 = vld [vmem:[%s1498_s10 + $0x70] sm:$0xff] }
  0x56   : > { %526 = vmatpush.msrb.mxu2 %v361_v63  ;;  %633 = vmatpush.msrb.mxu0 %v392_v5  ;;  %v262_v63 = vld [vmem:[%s1498_s10 + $0x78] sm:$0xff]  ;;  %v273_v5 = vld [vmem:[%s1498_s10 + $0xd0] sm:$0xff] }
  0x57   : > { %437 = vmatmul.f32.gmra.mxu0 %v259_v62  ;;  %490 = vmatmul.f32.gmra.mxu1 %v260_v0  ;;  %v252_v62 = vld [vmem:[%s1498_s10 + $0x28] sm:$0xff]  ;;  %v257_v0 = vld [vmem:[%s1498_s10 + $0x50] sm:$0xff] }
  0x58   : > { %511 = vmatmul.f32.gmra.mxu2 %v302_v1  ;;  %579 = vmatpush.msrb.mxu3 %v377_v3  ;;  %v267_v1 = vld [vmem:[%s1498_s10 + $0xa0] sm:$0xff]  ;;  %v268_v3 = vld [vmem:[%s1498_s10 + $0xa8] sm:$0xff] }
  0x59   : > { %527 = vmatpush.msrb.mxu2 %v360_v2  ;;  %458 = vmatmul.f32.gmra.mxu3 %v301_v4  ;;  %v258_v2 = vld [vmem:[%s1498_s10 + $0x58] sm:$0xff]  ;;  %v263_v4 = vld [vmem:[%s1498_s10 + $0x80] sm:$0xff] }
  0x5a   : > { %580 = vmatpush.msrb.mxu3 %v376_v7  ;;  %686 = vmatpush.msrb.mxu1 %v408_v8  ;;  %v274_v7 = vld [vmem:[%s1498_s10 + $0xd8] sm:$0xff]  ;;  %v269_v8 = vld [vmem:[%s1498_s10 + $0xb0] sm:$0xff] }
  0x5b   : > { %528 = vmatpush.msrb.mxu2 %v359_v6  ;;  %634 = vmatpush.msrb.mxu0 %v391_v9  ;;  %v264_v6 = vld [vmem:[%s1498_s10 + $0x88] sm:$0xff]  ;;  %v279_v9 = vld [vmem:[%s1498_s10 + $0x100] sm:$0xff] }
  0x5c   : > { %581 = vmatpush.msrb.mxu3 %v375_v11  ;;  %687 = vmatpush.msrb.mxu1 %v407_v12  ;;  %v280_v11 = vld [vmem:[%s1498_s10 + $0x108] sm:$0xff]  ;;  %v275_v12 = vld [vmem:[%s1498_s10 + $0xe0] sm:$0xff] }
  0x5d   : > { %529 = vmatpush.msrb.mxu2 %v358_v10  ;;  %635 = vmatpush.msrb.mxu0 %v390_v13  ;;  %v270_v10 = vld [vmem:[%s1498_s10 + $0xb8] sm:$0xff]  ;;  %v285_v13 = vld [vmem:[%s1498_s10 + $0x130] sm:$0xff] }
  0x5e   : > { %582 = vmatpush.msrb.mxu3 %v374_v18  ;;  %688 = vmatpush.msrb.mxu1 %v406_v21  ;;  %v282_v18 = vld [vmem:[%s1498_s10 + $0x118] sm:$0xff]  ;;  %v297_v21 = vld [vmem:[%s1498_s10 + $0x190] sm:$0xff] }
  0x5f   : > { %440 = vmatmul.f32.gmra.mxu0 %v265_v14  ;;  %530 = vmatpush.msrb.mxu2 %v357_v15  ;;  %v276_v14 = vld [vmem:[%s1498_s10 + $0xe8] sm:$0xff]  ;;  %v286_v15 = vld [vmem:[%s1498_s10 + $0x138] sm:$0xff] }
  0x60   : > { %493 = vmatmul.f32.gmra.mxu1 %v266_v16  ;;  %514 = vmatmul.f32.gmra.mxu2 %v308_v17  ;;  %v281_v16 = vld [vmem:[%s1498_s10 + $0x110] sm:$0xff]  ;;  %v291_v17 = vld [vmem:[%s1498_s10 + $0x160] sm:$0xff] }
  0x61   : > { %531 = vmatpush.msrb.mxu2 %v356_v19  ;;  %461 = vmatmul.f32.gmra.mxu3 %v307_v20  ;;  %v292_v19 = vld [vmem:[%s1498_s10 + $0x168] sm:$0xff]  ;;  %v287_v20 = vld [vmem:[%s1498_s10 + $0x140] sm:$0xff] }
  0x62   : > { %583 = vmatpush.msrb.mxu3 %v373_v22  ;;  %636 = vmatpush.msrb.mxu0 %v389_v24  ;;  %v288_v22 = vld [vmem:[%s1498_s10 + $0x148] sm:$0xff]  ;;  %v293_v24 = vld [vmem:[%s1498_s10 + $0x170] sm:$0xff] }
  0x63   : > { %532 = vmatpush.msrb.mxu2 %v355_v23  ;;  %689 = vmatpush.msrb.mxu1 %v405_v25  ;;  %v298_v23 = vld [vmem:[%s1498_s10 + $0x198] sm:$0xff]  ;;  %v303_v25 = vld [vmem:[%s1498_s10 + $0x1c0] sm:$0xff] }
  0x64   : > { %584 = vmatpush.msrb.mxu3 %v372_v26  ;;  %637 = vmatpush.msrb.mxu0 %v388_v28  ;;  %v294_v26 = vld [vmem:[%s1498_s10 + $0x178] sm:$0xff]  ;;  %v299_v28 = vld [vmem:[%s1498_s10 + $0x1a0] sm:$0xff] }
  0x65   : > { %533 = vmatpush.msrb.mxu2 %v354_v27  ;;  %690 = vmatpush.msrb.mxu1 %v404_v29  ;;  %v304_v27 = vld [vmem:[%s1498_s10 + $0x1c8] sm:$0xff]  ;;  %v309_v29 = vld [vmem:[%s1498_s10 + $0x1f0] sm:$0xff] }
  0x66   : > { %585 = vmatpush.msrb.mxu3 %v371_v31  ;;  %638 = vmatpush.msrb.mxu0 %v387_v37  ;;  %v310_v31 = vld [vmem:[%s1498_s10 + $0x1f8] sm:$0xff]  ;;  %v316_v37 = vld [vmem:[%s1498_s10 + $0x228] sm:$0xff] }
  0x67   : > { %443 = vmatmul.f32.gmra.mxu0 %v271_v30  ;;  %534 = vmatpush.msrb.mxu2 %v353_v34  ;;  %v300_v30 = vld [vmem:[%s1498_s10 + $0x1a8] sm:$0xff] }
  0x68   : > { %496 = vmatmul.f32.gmra.mxu1 %v272_v32  ;;  %517 = vmatmul.f32.gmra.mxu2 %v314_v33  ;;  %v305_v33 = vld [vmem:[%s1498_s10 + $0x1d0] sm:$0xff] }
  0x69   : > { %586 = vmatpush.msrb.mxu3 %v370_v35  ;;  %535 = vmatpush.msrb.mxu2 %v352_v38  ;;  %v315_v35 = vld [vmem:[%s1498_s10 + $0x220] sm:$0xff] }
  0x6a   : > { %464 = vmatmul.f32.gmra.mxu3 %v313_v36  ;;  %691 = vmatpush.msrb.mxu1 %v403_v40  ;;  %v306_v36 = vld [vmem:[%s1498_s10 + $0x1d8] sm:$0xff]  ;;  %v311_v40 = vld [vmem:[%s1498_s10 + $0x200] sm:$0xff] }
  0x6b   : > { %587 = vmatpush.msrb.mxu3 %v369_v39  ;;  %639 = vmatpush.msrb.mxu0 %v386_v41 }
  0x6c   : > { %536 = vmatpush.msrb.mxu2 %v351_v42  ;;  %692 = vmatpush.msrb.mxu1 %v402_v44 }
  0x6d   : > { %588 = vmatpush.msrb.mxu3 %v368_v43  ;;  %640 = vmatpush.msrb.mxu0 %v385_v45  ;;  %v312_v43 = vld [vmem:[%s1498_s10 + $0x208] sm:$0xff] }
  0x6e   : > { %693 = vmatpush.msrb.mxu1 %v401_v50  ;;  %v318_v50 = vld [vmem:[%s1498_s10 + $0x238] sm:$0xff] }
  0x6f   : > { %446 = vmatmul.f32.gmra.mxu0 %v277_v46  ;;  %589 = vmatpush.msrb.mxu3 %v367_v47  ;;  %v317_v47 = vld [vmem:[%s1498_s10 + $0x230] sm:$0xff]  ;;  %s1405_s10 = smov 119  }
  0x70   : > { %499 = vmatmul.f32.gmra.mxu1 %v278_v48  ;;  %537 = vmatmul.f32.vlgmr.msrb.gmra.mxu2 %v249_v49 }
  0x71   : > { %641 = vmatpush.msrb.mxu0 %v384_v51  ;;  %694 = vmatpush.msrb.mxu1 %v400_v53 }
  0x72   : > { %590 = vmatmul.f32.vlgmr.msrb.gmra.mxu3 %v250_v52 }
  0x73   : > { %642 = vmatpush.msrb.mxu0 %v383_v54  ;;  %695 = vmatpush.msrb.mxu1 %v399_v55 }
  0x77   : > { %449 = vmatmul.f32.gmra.mxu0 %v283_v56 }
  0x78   : > { %502 = vmatmul.f32.gmra.mxu1 %v284_v57  ;;  %540 = vmatmul.f32.gmra.mxu2 %v255_v58 }
  0x7a   : > { %593 = vmatmul.f32.gmra.mxu3 %v256_v59 }
  0x7f   : > { %643 = vmatmul.f32.vlgmr.msrb.gmra.mxu0 %v251_v60 }
  0x80   : > { %543 = vmatmul.f32.gmra.mxu2 %v261_v61  ;;  %696 = vmatmul.f32.vlgmr.msrb.gmra.mxu1 %v252_v62 }
  0x82   : > { %596 = vmatmul.f32.gmra.mxu3 %v262_v63 }
  0x87   : > { %646 = vmatmul.f32.gmra.mxu0 %v257_v0 }
  0x88   : > { %546 = vmatmul.f32.gmra.mxu2 %v267_v1  ;;  %699 = vmatmul.f32.gmra.mxu1 %v258_v2 }
  0x8a   : > { %599 = vmatmul.f32.gmra.mxu3 %v268_v3 }
  0x8f   : > { %649 = vmatmul.f32.gmra.mxu0 %v263_v4 }
  0x90   : > { %549 = vmatmul.f32.gmra.mxu2 %v273_v5  ;;  %702 = vmatmul.f32.gmra.mxu1 %v264_v6 }
  0x92   : > { %602 = vmatmul.f32.gmra.mxu3 %v274_v7 }
  0x97   : > { %652 = vmatmul.f32.gmra.mxu0 %v269_v8 }
  0x98   : > { %552 = vmatmul.f32.gmra.mxu2 %v279_v9  ;;  %705 = vmatmul.f32.gmra.mxu1 %v270_v10 }
  0x9a   : > { %605 = vmatmul.f32.gmra.mxu3 %v280_v11 }
  0x9f   : > { %655 = vmatmul.f32.gmra.mxu0 %v275_v12 }
  0xa0   : > { %555 = vmatmul.f32.gmra.mxu2 %v285_v13  ;;  %708 = vmatmul.f32.gmra.mxu1 %v276_v14 }
  0xa2   : > { %608 = vmatmul.f32.gmra.mxu3 %v286_v15 }
  0xa7   : > { %658 = vmatmul.f32.gmra.mxu0 %v281_v16 }
  0xa8   : > { %558 = vmatmul.f32.gmra.mxu2 %v291_v17  ;;  %711 = vmatmul.f32.gmra.mxu1 %v282_v18 }
  0xaa   : > { %611 = vmatmul.f32.gmra.mxu3 %v292_v19 }
  0xaf   : > { %661 = vmatmul.f32.gmra.mxu0 %v287_v20 }
  0xb0   : > { %561 = vmatmul.f32.gmra.mxu2 %v297_v21  ;;  %714 = vmatmul.f32.gmra.mxu1 %v288_v22 }
  0xb2   : > { %614 = vmatmul.f32.gmra.mxu3 %v298_v23 }
  0xb7   : > { %664 = vmatmul.f32.gmra.mxu0 %v293_v24 }
  0xb8   : > { %564 = vmatmul.f32.gmra.mxu2 %v303_v25  ;;  %717 = vmatmul.f32.gmra.mxu1 %v294_v26 }
  0xba   : > { %617 = vmatmul.f32.gmra.mxu3 %v304_v27 }
  0xbf   : > { %667 = vmatmul.f32.gmra.mxu0 %v299_v28 }
  0xc0   : > { %567 = vmatmul.f32.gmra.mxu2 %v309_v29  ;;  %720 = vmatmul.f32.gmra.mxu1 %v300_v30 }
  0xc2   : > { %620 = vmatmul.f32.gmra.mxu3 %v310_v31 }
  0xc4   : > { %v432_v32 = vpop.f32.mrf.mxu0  ;;  %v485_v34 = vpop.f32.mrf.mxu1 }
  0xc5   : > { %v486_v5 = vadd.f32 %v485_v34, %v432_v32 }
  0xc7   : > { %670 = vmatmul.f32.gmra.mxu0 %v305_v33 }
  0xc8   : > { %570 = vmatmul.f32.gmra.mxu2 %v315_v35  ;;  %723 = vmatmul.f32.gmra.mxu1 %v306_v36 }
  0xca   : > { %623 = vmatmul.f32.gmra.mxu3 %v316_v37 }
  0xcb   : > { %v506_v38 = vpop.f32.mrf.mxu2 }
  0xcc   : > { %v435_v39 = vpop.f32.mrf.mxu0  ;;  %v453_v41 = vpop.f32.mrf.mxu3 }
  0xcd   : > { %v488_v42 = vpop.f32.mrf.mxu1  ;;  %v1862_v44 = vadd.f32 %v506_v38, %v453_v41 }
  0xce   : > { %v489_v12 = vadd.f32 %v488_v42, %v435_v39 }
  0xcf   : > { %673 = vmatmul.f32.gmra.mxu0 %v311_v40 }
  0xd0   : > { %726 = vmatmul.f32.gmra.mxu1 %v312_v43 }
  0xd3   : > { %v509_v45 = vpop.f32.mrf.mxu2 }
  0xd4   : > { %v438_v46 = vpop.f32.mrf.mxu0  ;;  %v456_v48 = vpop.f32.mrf.mxu3 }
  0xd5   : > { %v491_v49 = vpop.f32.mrf.mxu1  ;;  %v1866_v51 = vadd.f32 %v509_v45, %v456_v48 }
  0xd6   : > { %v492_v25 = vadd.f32 %v491_v49, %v438_v46 }
  0xd7   : > { %676 = vmatmul.f32.gmra.mxu0 %v317_v47 }
  0xd8   : > { %729 = vmatmul.f32.gmra.mxu1 %v318_v50 }
  0xdb   : > { %v512_v52 = vpop.f32.mrf.mxu2 }
  0xdc   : > { %v441_v53 = vpop.f32.mrf.mxu0  ;;  %v459_v54 = vpop.f32.mrf.mxu3 }
  0xdd   : > { %v494_v55 = vpop.f32.mrf.mxu1  ;;  %v1868_v56 = vadd.f32 %v512_v52, %v459_v54 }
  0xde   : > { %v495_v38 = vadd.f32 %v494_v55, %v441_v53 }
  0xe3   : > { %v515_v57 = vpop.f32.mrf.mxu2 }
  0xe4   : > { %v1870_v58 = vpop.f32.mrf.mxu0  ;;  %v462_v59 = vpop.f32.mrf.mxu3 }
  0xe5   : > { %v1872_v60 = vpop.f32.mrf.mxu1  ;;  %v1874_v61 = vadd.f32 %v515_v57, %v462_v59 }
  0xe6   : > { %v498_v59 = vadd.f32 %v1872_v60, %v1870_v58 }
  0xeb   : > { %v518_v62 = vpop.f32.mrf.mxu2 }
  0xec   : > { %v1876_v63 = vpop.f32.mrf.mxu0 }
  0xed   : > { %v465_v0 = vpop.f32.mrf.mxu3  ;;  %v1878_v1 = vpop.f32.mrf.mxu1 }
  0xee   : > { %v1880_v2 = vadd.f32 %v518_v62, %v465_v0 }
  0xf3   : > { %v538_v3 = vpop.f32.mrf.mxu2 }
  0xf4   : > { %v1882_v4 = vpop.f32.mrf.mxu0  ;;  %v539_v8 = vadd.f32 %v538_v3, %v486_v5 }
  0xf5   : > { %v1884_v6 = vpop.f32.mrf.mxu1  ;;  %v591_v7 = vpop.f32.mrf.mxu3 }
  0xf6   : > { %v592_v9 = vadd.f32 %v591_v7, %v539_v8 }
  0xfb   : > { %v541_v10 = vpop.f32.mrf.mxu2 }
  0xfc   : > { %v644_v11 = vpop.f32.mrf.mxu0  ;;  %v542_v16 = vadd.f32 %v541_v10, %v489_v12 }
  0xfd   : > { %v594_v13 = vpop.f32.mrf.mxu3  ;;  %v645_v14 = vadd.f32 %v644_v11, %v592_v9  ;;  %v697_v15 = vpop.f32.mrf.mxu1 }
  0xfe   : > { %v595_v20 = vadd.f32 %v594_v13, %v542_v16 }
  0xff   : > { %v1886_v17 = vadd.f32 %v697_v15, %v645_v14  ;;  %v501_v14 = vadd.f32 %v1878_v1, %v1876_v63 }
 0x101   : > { %v745_v18 = vrot.slane %v1886_v17, 4  ;;  %v1245_v22 = vrot.slane %v1886_v17, 9 }
 0x103   : > { %v544_v21 = vpop.f32.mrf.mxu2  ;;  %v774_v23 = vrot.slane %v745_v18, 5 }
 0x104   : > { %v647_v24 = vpop.f32.mrf.mxu0  ;;  %v545_v30 = vadd.f32 %v544_v21, %v492_v25 }
 0x105   : > { %v597_v26 = vpop.f32.mrf.mxu3  ;;  %v648_v27 = vadd.f32 %v647_v24, %v595_v20  ;;  %v700_v28 = vpop.f32.mrf.mxu1  ;;  %v775_v29 = vsel %vm1889_vm2, %v1245_v22, %v774_v23  ;;  %v776_v36 = vrot.slane %v774_v23, 4 }
 0x106   : > { %836 = vrot.lane.b32.xlu0 %v775_v29, %s1405_s10  ;;  %v598_v33 = vadd.f32 %v597_v26, %v545_v30  ;;  %v504_v29 = vadd.f32 %v1884_v6, %v1882_v4 }
 0x107   : > { %v1899_v31 = vadd.f32 %v700_v28, %v648_v27 }
 0x109   : > { %v777_v32 = vrot.slane %v1899_v31, 5  ;;  %v746_v39 = vrot.slane %v1899_v31, 4 }
 0x10b   : > { %v547_v34 = vpop.f32.mrf.mxu2  ;;  %v779_v35 = vrot.slane %v777_v32, 4  ;;  %v778_v43 = vsel %vm1889_vm2, %v776_v36, %v777_v32  ;;  %v1246_v49 = vrot.slane %v746_v39, 9 }
 0x10c   : > { %v650_v37 = vpop.f32.mrf.mxu0  ;;  %v548_v45 = vadd.f32 %v547_v34, %v495_v38 }
 0x10d   : > { %v600_v40 = vpop.f32.mrf.mxu3  ;;  %v651_v41 = vadd.f32 %v650_v37, %v598_v33  ;;  %840 = vrot.lane.b32.xlu1 %v779_v35, %s1405_s10  ;;  %v703_v42 = vpop.f32.mrf.mxu1 }
 0x10e   : > { %838 = vrot.lane.b32.xlu0 %v778_v43, %s1405_s10  ;;  %v601_v50 = vadd.f32 %v600_v40, %v548_v45 }
 0x10f   : > { %v1907_v46 = vadd.f32 %v703_v42, %v651_v41 }
 0x111   : > { %v747_v47 = vrot.slane %v1907_v46, 4  ;;  %v782_v48 = vrot.slane %v1907_v46, 5 }
 0x113   : > { %v550_v52 = vpop.f32.mrf.mxu2  ;;  %v783_v53 = vsel %vm1889_vm2, %v1246_v49, %v782_v48  ;;  %v784_v54 = vrot.slane %v782_v48, 4  ;;  %v785_v55 = vrot.slane %v747_v47, 5 }
 0x114   : > { %v653_v57 = vpop.f32.mrf.mxu0  ;;  %v551_v7 = vadd.f32 %v550_v52, %v498_v59 }
 0x115   : > { %v603_v62 = vpop.f32.mrf.mxu3  ;;  %v654_v0 = vadd.f32 %v653_v57, %v601_v50  ;;  %842 = vrot.lane.b32.xlu1 %v783_v53, %s1405_s10  ;;  %v706_v3 = vpop.f32.mrf.mxu1  ;;  %v786_v5 = vsel %vm1889_vm2, %v784_v54, %v785_v55  ;;  %v787_v13 = vrot.slane %v785_v55, 4 }
 0x116   : > { %844 = vrot.lane.b32.xlu2 %v786_v5, %s1405_s10  ;;  %v604_v10 = vadd.f32 %v603_v62, %v551_v7 }
 0x117   : > { %v1923_v8 = vadd.f32 %v706_v3, %v654_v0 }
 0x119   : > { %v748_v9 = vrot.slane %v1923_v8, 4  ;;  %v1247_v11 = vrot.slane %v1923_v8, 9 }
 0x11b   : > { %v553_v12 = vpop.f32.mrf.mxu2  ;;  %v790_v58 = vrot.slane %v748_v9, 5 }
 0x11c   : > { %v656_v60 = vpop.f32.mrf.mxu0  ;;  %v554_v22 = vadd.f32 %v553_v12, %v501_v14 }
 0x11d   : > { %v606_v15 = vpop.f32.mrf.mxu3  ;;  %v657_v16 = vadd.f32 %v656_v60, %v604_v10  ;;  %v709_v20 = vpop.f32.mrf.mxu1  ;;  %v791_v21 = vsel %vm1889_vm2, %v1247_v11, %v790_v58  ;;  %v792_v25 = vrot.slane %v790_v58, 4 }
 0x11e   : > { %846 = vrot.lane.b32.xlu2 %v787_v13, %s1405_s10  ;;  %848 = vrot.lane.b32.xlu0 %v791_v21, %s1405_s10  ;;  %v607_v26 = vadd.f32 %v606_v15, %v554_v22 }
 0x11f   : > { %v1935_v23 = vadd.f32 %v709_v20, %v657_v16 }
 0x121   : > { %v793_v24 = vrot.slane %v1935_v23, 5  ;;  %v749_v30 = vrot.slane %v1935_v23, 4 }
 0x123   : > { %v556_v27 = vpop.f32.mrf.mxu2  ;;  %v794_v63 = vsel %vm1889_vm2, %v792_v25, %v793_v24  ;;  %v795_v1 = vrot.slane %v793_v24, 4  ;;  %v1248_v40 = vrot.slane %v749_v30, 9 }
 0x124   : > { %v659_v28 = vpop.f32.mrf.mxu0  ;;  %850 = vrot.lane.b32.xlu1 %v794_v63, %s1405_s10  ;;  %v557_v35 = vadd.f32 %v556_v27, %v504_v29 }
 0x125   : > { %v609_v32 = vpop.f32.mrf.mxu3  ;;  %v660_v33 = vadd.f32 %v659_v28, %v607_v26  ;;  %v712_v34 = vpop.f32.mrf.mxu1 }
 0x126   : > { %852 = vrot.lane.b32.xlu2 %v795_v1, %s1405_s10  ;;  %v610_v41 = vadd.f32 %v609_v32, %v557_v35 }
 0x127   : > { %v1945_v36 = vadd.f32 %v712_v34, %v660_v33 }
 0x129   : > { %v750_v37 = vrot.slane %v1945_v36, 4  ;;  %v798_v38 = vrot.slane %v1945_v36, 5 }
 0x12b   : > { %v559_v42 = vpop.f32.mrf.mxu2  ;;  %v799_v4 = vsel %vm1889_vm2, %v1248_v40, %v798_v38  ;;  %v800_v6 = vrot.slane %v798_v38, 4  ;;  %v801_v43 = vrot.slane %v750_v37, 5 }
 0x12c   : > { %v662_v45 = vpop.f32.mrf.mxu0  ;;  %854 = vrot.lane.b32.xlu0 %v799_v4, %s1405_s10  ;;  %v560_v54 = vadd.f32 %v559_v42, %v1862_v44 }
 0x12d   : > { %v612_v48 = vpop.f32.mrf.mxu3  ;;  %v663_v49 = vadd.f32 %v662_v45, %v610_v41  ;;  %v715_v50 = vpop.f32.mrf.mxu1  ;;  %v802_v52 = vsel %vm1889_vm2, %v800_v6, %v801_v43  ;;  %v803_v53 = vrot.slane %v801_v43, 4 }
 0x12e   : > { %856 = vrot.lane.b32.xlu1 %v802_v52, %s1405_s10  ;;  %v613_v59 = vadd.f32 %v612_v48, %v560_v54 }
 0x12f   : > { %v1960_v55 = vadd.f32 %v715_v50, %v663_v49  ;;  %858 = vrot.lane.b32.xlu2 %v803_v53, %s1405_s10 }
 0x131   : > { %v751_v57 = vrot.slane %v1960_v55, 4  ;;  %v1249_v62 = vrot.slane %v1960_v55, 9 }
 0x133   : > { %v562_v0 = vpop.f32.mrf.mxu2  ;;  %v806_v3 = vrot.slane %v751_v57, 5 }
 0x134   : > { %v665_v5 = vpop.f32.mrf.mxu0  ;;  %v563_v12 = vadd.f32 %v562_v0, %v1866_v51 }
 0x135   : > { %v615_v7 = vpop.f32.mrf.mxu3  ;;  %v666_v10 = vadd.f32 %v665_v5, %v613_v59  ;;  %v718_v11 = vpop.f32.mrf.mxu1  ;;  %v807_v44 = vsel %vm1889_vm2, %v1249_v62, %v806_v3  ;;  %v808_v13 = vrot.slane %v806_v3, 4 }
 0x136   : > { %860 = vrot.lane.b32.xlu0 %v807_v44, %s1405_s10  ;;  %v616_v14 = vadd.f32 %v615_v7, %v563_v12 }
 0x137   : > { %v1971_v58 = vadd.f32 %v718_v11, %v666_v10 }
 0x139   : > { %v809_v60 = vrot.slane %v1971_v58, 5  ;;  %v752_v22 = vrot.slane %v1971_v58, 4 }
 0x13b   : > { %v565_v15 = vpop.f32.mrf.mxu2  ;;  %v810_v16 = vsel %vm1889_vm2, %v808_v13, %v809_v60  ;;  %v811_v20 = vrot.slane %v809_v60, 4  ;;  %v1250_v28 = vrot.slane %v752_v22, 9 }
 0x13c   : > { %v668_v21 = vpop.f32.mrf.mxu0  ;;  %862 = vrot.lane.b32.xlu1 %v810_v16, %s1405_s10  ;;  %v566_v26 = vadd.f32 %v565_v15, %v1868_v56 }
 0x13d   : > { %v618_v24 = vpop.f32.mrf.mxu3  ;;  %v669_v25 = vadd.f32 %v668_v21, %v616_v14  ;;  %864 = vrot.lane.b32.xlu2 %v811_v20, %s1405_s10  ;;  %v721_v51 = vpop.f32.mrf.mxu1 }
 0x13e   : > { %v619_v29 = vadd.f32 %v618_v24, %v566_v26 }
 0x13f   : > { %v1980_v27 = vadd.f32 %v721_v51, %v669_v25 }
 0x141   : > { %v753_v63 = vrot.slane %v1980_v27, 4  ;;  %v814_v1 = vrot.slane %v1980_v27, 5 }
 0x143   : > { %v568_v32 = vpop.f32.mrf.mxu2  ;;  %v815_v33 = vsel %vm1889_vm2, %v1250_v28, %v814_v1  ;;  %v816_v34 = vrot.slane %v814_v1, 4  ;;  %v817_v35 = vrot.slane %v753_v63, 5 }
 0x144   : > { %v671_v38 = vpop.f32.mrf.mxu0  ;;  %866 = vrot.lane.b32.xlu0 %v815_v33, %s1405_s10  ;;  %v569_v6 = vadd.f32 %v568_v32, %v1874_v61 }
 0x145   : > { %v672_v56 = vadd.f32 %v671_v38, %v619_v29  ;;  %v724_v40 = vpop.f32.mrf.mxu1  ;;  %v818_v41 = vsel %vm1889_vm2, %v816_v34, %v817_v35  ;;  %v819_v42 = vrot.slane %v817_v35, 4  ;;  %v621_v4 = vpop.f32.mrf.mxu3 }
 0x146   : > { %868 = vrot.lane.b32.xlu1 %v818_v41, %s1405_s10  ;;  %v622_v48 = vadd.f32 %v621_v4, %v569_v6 }
 0x147   : > { %v1995_v43 = vadd.f32 %v724_v40, %v672_v56  ;;  %870 = vrot.lane.b32.xlu2 %v819_v42, %s1405_s10  ;;  %v1112_v40 = vld [vmem:[%s2128_s3 + $0x8] sm:$0x1] }
 0x148   : > { %1253 = vmatpush.msk.msra.mxu2 %vm1148_vm3, %v1112_v40 }
 0x149   : > { %v754_v45 = vrot.slane %v1995_v43, 4  ;;  %v1251_v49 = vrot.slane %v1995_v43, 9 }
 0x14b   : > { %v822_v50 = vrot.slane %v754_v45, 5  ;;  %v571_v52 = vpop.f32.mrf.mxu2 }
 0x14c   : > { %v674_v53 = vpop.f32.mrf.mxu0  ;;  %v572_v61 = vadd.f32 %v571_v52, %v1880_v2 }
 0x14d   : > { %v675_v54 = vadd.f32 %v674_v53, %v622_v48  ;;  %v727_v59 = vpop.f32.mrf.mxu1  ;;  %v823_v62 = vsel %vm1889_vm2, %v1251_v49, %v822_v50  ;;  %v624_v3 = vpop.f32.mrf.mxu3  ;;  %v824_v7 = vrot.slane %v822_v50, 4 }
 0x14e   : > { %872 = vrot.lane.b32.xlu0 %v823_v62, %s1405_s10  ;;  %v625_v10 = vadd.f32 %v624_v3, %v572_v61 }
 0x14f   : > { %v2006_v0 = vadd.f32 %v727_v59, %v675_v54 }
 0x151   : > { %v825_v5 = vrot.slane %v2006_v0, 5  ;;  %v755_v60 = vrot.slane %v2006_v0, 4 }
 0x153   : > { %v826_v11 = vsel %vm1889_vm2, %v824_v7, %v825_v5  ;;  %v827_v44 = vrot.slane %v825_v5, 4  ;;  %v1252_v20 = vrot.slane %v755_v60, 9 }
 0x154   : > { %v677_v12 = vpop.f32.mrf.mxu0  ;;  %874 = vrot.lane.b32.xlu1 %v826_v11, %s1405_s10 }
 0x155   : > { %v678_v13 = vadd.f32 %v677_v12, %v625_v10  ;;  %876 = vrot.lane.b32.xlu2 %v827_v44, %s1405_s10  ;;  %v730_v2 = vpop.f32.mrf.mxu1 }
 0x157   : > { %v2014_v14 = vadd.f32 %v730_v2, %v678_v13 }
 0x159   : > { %v756_v15 = vrot.slane %v2014_v14, 4  ;;  %v830_v16 = vrot.slane %v2014_v14, 5 }
 0x15b   : > { %v831_v21 = vsel %vm1889_vm2, %v1252_v20, %v830_v16  ;;  %v832_v24 = vrot.slane %v830_v16, 4  ;;  %v833_v25 = vrot.slane %v756_v15, 5 }
 0x15c   : > { %878 = vrot.lane.b32.xlu0 %v831_v21, %s1405_s10 }
 0x15d   : > { %v834_v51 = vsel %vm1889_vm2, %v832_v24, %v833_v25  ;;  %v835_v26 = vrot.slane %v833_v25, 4 }
 0x15e   : > { %880 = vrot.lane.b32.xlu1 %v834_v51, %s1405_s10 }
 0x15f   : > { %882 = vrot.lane.b32.xlu2 %v835_v26, %s1405_s10  ;;  %v2055_v26 = vld [vmem:[%s2127_s2] ss:$0 sm:$0xff] }
 0x170   : > { %v845_v1 = vpop.permute.xlu2 %844 }
 0x171   : > { %v912_v28 = vadd.f32 %v845_v1, %v1907_v46 }
 0x173   : > { %966 = vst [vmem:[#allocation1 + $0x21] ss:$2 sm:$0xff] %v912_v28 }
 0x178   : > { %v847_v29 = vpop.permute.xlu2 %846  ;;  %v837_v32 = vpop.permute.xlu0 %836 }
 0x179   : > { %v913_v33 = vadd.f32 %v847_v29, %v747_v47  ;;  %v908_v34 = vadd.f32 %v837_v32, %v1886_v17 }
 0x17b   : > { %968 = vst [vmem:[#allocation1 + $0x30] ss:$2 sm:$0xff] %v913_v33 }
 0x17c   : > { %956 = vst [vmem:[#allocation1] ss:$2 sm:$0xff] %v908_v34 }
 0x17f   : > { %v841_v19 = vpop.permute.xlu1 %840 }
 0x180   : > { %v910_v35 = vadd.f32 %v841_v19, %v1899_v31  ;;  %v853_v38 = vpop.permute.xlu2 %852  ;;  %v839_v56 = vpop.permute.xlu0 %838 }
 0x181   : > { %v909_v41 = vadd.f32 %v839_v56, %v745_v18  ;;  %v916_v47 = vadd.f32 %v853_v38, %v1935_v23  ;;  %v1111_v23 = vld [vmem:[%s2128_s3] sm:$0xff] }
 0x182   : > { %960 = vst [vmem:[#allocation1 + $0x10] ss:$2 sm:$0xff] %v910_v35  ;;  %v970_v49 = vld.sshfl [vmem:[#allocation1 + $0x30] sm:$0xff pattern:$0x75316420]  ;;  %1167 = vmatpush.msra.mxu2 %v1111_v23 }
 0x183   : > { %958 = vst [vmem:[#allocation1 + $0x1] ss:$2 sm:$0xff] %v909_v41  ;;  %v1029_v61 = vsel %vm1019_vm5, %v970_v49, -inf }
 0x187   : > { %v843_v46 = vpop.permute.xlu1 %842 }
 0x188   : > { %v911_v42 = vadd.f32 %v843_v46, %v746_v39 }
 0x189   : > { %v962_v4 = vld.sshfl [vmem:[#allocation1 + $0x10] sm:$0xff pattern:$0x75316420]  ;;  %v859_v6 = vpop.permute.xlu2 %858 }
 0x18a   : > { %973 = vst [vmem:[#allocation1 + $0x10] ss:$2 sm:$0xff] %v916_v47  ;;  %v1020_v48 = vsel %vm1019_vm5, %v962_v4, -inf  ;;  %v919_v17 = vadd.f32 %v859_v6, %v750_v37  ;;  %v961_v18 = vld.sshfl [vmem:[#allocation1] sm:$0xff pattern:$0x75316420] }
 0x18b   : > { %964 = vst [vmem:[#allocation1 + $0x20] ss:$2 sm:$0xff] %v911_v42  ;;  %v1018_v50 = vsel %vm1017_vm4, %v961_v18, -inf }
 0x18c   : > { %978 = vst [vmem:[#allocation1 + $0x30] ss:$2 sm:$0xff] %v919_v17  ;;  %v1021_v52 = vmax.f32 %v1018_v50, %v1020_v48 }
 0x18e   : > { %v1022_v53 = vrot.slane %v1021_v52, 4 }
 0x190   : > { %v849_v31 = vpop.permute.xlu0 %848  ;;  %v1023_v39 = vmax.f32 %v1021_v52, %v1022_v53 }
 0x191   : > { %v914_v54 = vadd.f32 %v849_v31, %v1923_v8  ;;  %v975_v2 = vld.sshfl [vmem:[#allocation1 + $0x10] sm:$0xff pattern:$0x75316420] }
 0x192   : > { %v969_v59 = vld.sshfl [vmem:[#allocation1 + $0x20] sm:$0xff pattern:$0x75316420]  ;;  %v1024_v62 = vrot.slane %v1023_v39, 2 }
 0x193   : > { %v1028_v3 = vsel %vm1017_vm4, %v969_v59, -inf  ;;  %971 = vst [vmem:[#allocation1] ss:$2 sm:$0xff] %v914_v54  ;;  %v980_v19 = vld.sshfl [vmem:[#allocation1 + $0x30] sm:$0xff pattern:$0x75316420] }
 0x194   : > { %v1030_v37 = vmax.f32 %v1028_v3, %v1029_v61  ;;  %v1025_v10 = vmax.f32 %v1023_v39, %v1024_v62  ;;  %v1047_v59 = vsel %vm1019_vm5, %v980_v19, -inf }
 0x196   : > { %v1031_v5 = vrot.slane %v1030_v37, 4  ;;  %v851_v7 = vpop.permute.xlu1 %850  ;;  %v1026_v20 = vrot.slane %v1025_v10, 1 }
 0x197   : > { %v915_v11 = vadd.f32 %v851_v7, %v748_v9  ;;  %v865_v44 = vpop.permute.xlu2 %864 }
 0x198   : > { %v1032_v12 = vmax.f32 %v1030_v37, %v1031_v5  ;;  %v922_v13 = vadd.f32 %v865_v44, %v1971_v58  ;;  %v1027_v51 = vmax.f32 %v1025_v10, %v1026_v20 }
 0x199   : > { %972 = vst [vmem:[#allocation1 + $0x1] ss:$2 sm:$0xff] %v915_v11 }
 0x19a   : > { %v1033_v16 = vrot.slane %v1032_v12, 2  ;;  %983 = vst [vmem:[#allocation1 + $0x10] ss:$2 sm:$0xff] %v922_v13  ;;  %v1095_v33 = vadd.f32 %v2055_v26, %v1027_v51 }
 0x19c   : > { %v1034_v21 = vmax.f32 %v1032_v12, %v1033_v16  ;;  %v1103_v35 = vmax.f32 %v1095_v33, 0.0 }
 0x19e   : > { %v1035_v24 = vrot.slane %v1034_v21, 1  ;;  %v855_v25 = vpop.permute.xlu0 %854 }
 0x19f   : > { %v917_v8 = vadd.f32 %v855_v25, %v749_v30 }
 0x1a0   : > { %v1036_v9 = vmax.f32 %v1034_v21, %v1035_v24  ;;  %v857_v1 = vpop.permute.xlu1 %856  ;;  %v974_v40 = vld.sshfl [vmem:[#allocation1] sm:$0xff pattern:$0x75316420] }
 0x1a1   : > { %976 = vst [vmem:[#allocation1 + $0x20] ss:$2 sm:$0xff] %v917_v8  ;;  %v918_v28 = vadd.f32 %v857_v1, %v1945_v36  ;;  %v871_v29 = vpop.permute.xlu2 %870  ;;  %v985_v4 = vld.sshfl [vmem:[#allocation1 + $0x10] sm:$0xff pattern:$0x75316420]  ;;  %v1037_v53 = vsel %vm1017_vm4, %v974_v40, -inf }
 0x1a2   : > { %v925_v32 = vadd.f32 %v871_v29, %v753_v63  ;;  %v1096_v34 = vadd.f32 %v2055_v26, %v1036_v9  ;;  %v1056_v3 = vsel %vm1019_vm5, %v985_v4, -inf }
 0x1a3   : > { %977 = vst [vmem:[#allocation1 + $0x21] ss:$2 sm:$0xff] %v918_v28 }
 0x1a4   : > { %988 = vst [vmem:[#allocation1 + $0x30] ss:$2 sm:$0xff] %v925_v32  ;;  %v1104_v30 = vmax.f32 %v1096_v34, 0.0 }
 0x1a6   : > { %v1125_v36 = vrot.slane %v1104_v30, 7 }
 0x1a8   : > { %v861_v38 = vpop.permute.xlu0 %860  ;;  %v2067_v56 = vsel %vm1126_vm6, %v1125_v36, %v1103_v35 }
 0x1a9   : > { %v920_v63 = vadd.f32 %v861_v38, %v1960_v55 }
 0x1aa   : > { %v979_v17 = vld.sshfl [vmem:[#allocation1 + $0x20] sm:$0xff pattern:$0x75316420] }
 0x1ab   : > { %981 = vst [vmem:[#allocation1] ss:$2 sm:$0xff] %v920_v63  ;;  %v1046_v39 = vsel %vm1017_vm4, %v979_v17, -inf }
 0x1ac   : > { %v1048_v61 = vmax.f32 %v1046_v39, %v1047_v59 }
 0x1ae   : > { %v863_v41 = vpop.permute.xlu1 %862  ;;  %v1049_v12 = vrot.slane %v1048_v61, 4 }
 0x1af   : > { %v921_v46 = vadd.f32 %v863_v41, %v751_v57  ;;  %v877_v47 = vpop.permute.xlu2 %876  ;;  %v990_v57 = vld.sshfl [vmem:[#allocation1 + $0x30] sm:$0xff pattern:$0x75316420] }
 0x1b0   : > { %v928_v42 = vadd.f32 %v877_v47, %v2006_v0  ;;  %v1065_v5 = vsel %vm1019_vm5, %v990_v57, -inf  ;;  %v1050_v20 = vmax.f32 %v1048_v61, %v1049_v12 }
 0x1b1   : > { %982 = vst [vmem:[#allocation1 + $0x1] ss:$2 sm:$0xff] %v921_v46 }
 0x1b2   : > { %993 = vst [vmem:[#allocation1 + $0x10] ss:$2 sm:$0xff] %v928_v42  ;;  %v1051_v29 = vrot.slane %v1050_v20, 2 }
 0x1b4   : > { %v1052_v30 = vmax.f32 %v1050_v20, %v1051_v29 }
 0x1b6   : > { %v867_v6 = vpop.permute.xlu0 %866  ;;  %v1053_v40 = vrot.slane %v1052_v30, 1 }
 0x1b7   : > { %v923_v48 = vadd.f32 %v867_v6, %v752_v22  ;;  %v1038_v22 = vsel %vm1019_vm5, %v975_v2, -inf }
 0x1b8   : > { %v869_v18 = vpop.permute.xlu1 %868  ;;  %v984_v52 = vld.sshfl [vmem:[#allocation1] sm:$0xff pattern:$0x75316420]  ;;  %v1039_v62 = vmax.f32 %v1037_v53, %v1038_v22  ;;  %v1054_v17 = vmax.f32 %v1052_v30, %v1053_v40 }
 0x1b9   : > { %986 = vst [vmem:[#allocation1 + $0x20] ss:$2 sm:$0xff] %v923_v48  ;;  %v924_v49 = vadd.f32 %v869_v18, %v1980_v27  ;;  %v883_v50 = vpop.permute.xlu2 %882  ;;  %v1055_v27 = vsel %vm1017_vm4, %v984_v52, -inf  ;;  %v995_v25 = vld.sshfl [vmem:[#allocation1 + $0x10] sm:$0xff pattern:$0x75316420] }
 0x1ba   : > { %v931_v55 = vadd.f32 %v883_v50, %v756_v15  ;;  %v1057_v37 = vmax.f32 %v1055_v27, %v1056_v3  ;;  %v1040_v11 = vrot.slane %v1039_v62, 4  ;;  %v1074_v33 = vsel %vm1019_vm5, %v995_v25, -inf }
 0x1bb   : > { %987 = vst [vmem:[#allocation1 + $0x21] ss:$2 sm:$0xff] %v924_v49  ;;  %v1098_v39 = vadd.f32 %v2055_v26, %v1054_v17 }
 0x1bc   : > { %998 = vst [vmem:[#allocation1 + $0x30] ss:$2 sm:$0xff] %v931_v55  ;;  %v1058_v13 = vrot.slane %v1057_v37, 4  ;;  %v1041_v16 = vmax.f32 %v1039_v62, %v1040_v11 }
 0x1be   : > { %v1059_v21 = vmax.f32 %v1057_v37, %v1058_v13  ;;  %v1042_v9 = vrot.slane %v1041_v16, 2 }
 0x1c0   : > { %v873_v31 = vpop.permute.xlu0 %872  ;;  %v1043_v23 = vmax.f32 %v1041_v16, %v1042_v9 }
 0x1c1   : > { %v926_v58 = vadd.f32 %v873_v31, %v1995_v43 }
 0x1c2   : > { %v989_v54 = vld.sshfl [vmem:[#allocation1 + $0x20] sm:$0xff pattern:$0x75316420]  ;;  %v1044_v38 = vrot.slane %v1043_v23, 1 }
 0x1c3   : > { %991 = vst [vmem:[#allocation1] ss:$2 sm:$0xff] %v926_v58  ;;  %v1064_v15 = vsel %vm1017_vm4, %v989_v54, -inf  ;;  %v1000_v63 = vld.sshfl [vmem:[#allocation1 + $0x30] sm:$0xff pattern:$0x75316420] }
 0x1c4   : > { %v1066_v10 = vmax.f32 %v1064_v15, %v1065_v5  ;;  %v1045_v4 = vmax.f32 %v1043_v23, %v1044_v38  ;;  %v1083_v48 = vsel %vm1019_vm5, %v1000_v63, -inf  ;;  %v1106_v15 = vmax.f32 %v1098_v39, 0.0 }
 0x1c6   : > { %v875_v7 = vpop.permute.xlu1 %874  ;;  %v1067_v2 = vrot.slane %v1066_v10, 4  ;;  %v1097_v53 = vadd.f32 %v2055_v26, %v1045_v4  ;;  %v1131_v11 = vrot.slane %v1106_v15, 5 }
 0x1c7   : > { %v927_v44 = vadd.f32 %v875_v7, %v754_v45  ;;  %v1060_v45 = vrot.slane %v1059_v21, 2 }
 0x1c8   : > { %v1068_v51 = vmax.f32 %v1066_v10, %v1067_v2  ;;  %v1105_v59 = vmax.f32 %v1097_v53, 0.0 }
 0x1c9   : > { %992 = vst [vmem:[#allocation1 + $0x1] ss:$2 sm:$0xff] %v927_v44  ;;  %v1061_v0 = vmax.f32 %v1059_v21, %v1060_v45 }
 0x1ca   : > { %v1069_v34 = vrot.slane %v1068_v51, 2  ;;  %v1128_v7 = vrot.slane %v1105_v59, 6 }
 0x1cb   : > { %v1062_v46 = vrot.slane %v1061_v0, 1 }
 0x1cc   : > { %v1130_v2 = vsel %vm1129_vm7, %v1128_v7, %v2067_v56 }
 0x1cd   : > { %v1063_v50 = vmax.f32 %v1061_v0, %v1062_v46  ;;  %v1133_v21 = vsel %vm1132_vm8, %v1131_v11, %v1130_v2 }
 0x1ce   : > { %v879_v24 = vpop.permute.xlu0 %878 }
 0x1cf   : > { %v929_v8 = vadd.f32 %v879_v24, %v755_v60  ;;  %v1070_v60 = vmax.f32 %v1068_v51, %v1069_v34  ;;  %v1099_v58 = vadd.f32 %v2055_v26, %v1063_v50 }
 0x1d0   : > { %v881_v1 = vpop.permute.xlu1 %880  ;;  %v994_v28 = vld.sshfl [vmem:[#allocation1] sm:$0xff pattern:$0x75316420] }
 0x1d1   : > { %996 = vst [vmem:[#allocation1 + $0x20] ss:$2 sm:$0xff] %v929_v8  ;;  %v930_v43 = vadd.f32 %v881_v1, %v2014_v14  ;;  %v1073_v32 = vsel %vm1017_vm4, %v994_v28, -inf  ;;  %v1071_v47 = vrot.slane %v1070_v60, 1  ;;  %v1107_v61 = vmax.f32 %v1099_v58, 0.0 }
 0x1d2   : > { %v1075_v19 = vmax.f32 %v1073_v32, %v1074_v33 }
 0x1d3   : > { %997 = vst [vmem:[#allocation1 + $0x21] ss:$2 sm:$0xff] %v930_v43  ;;  %v1072_v55 = vmax.f32 %v1070_v60, %v1071_v47  ;;  %v1134_v44 = vrot.slane %v1107_v61, 4 }
 0x1d4   : > { %v1076_v35 = vrot.slane %v1075_v19, 4 }
 0x1d5   : > { %v1100_v54 = vadd.f32 %v2055_v26, %v1072_v55  ;;  %v1136_v24 = vsel %vm1135_vm9, %v1134_v44, %v1133_v21 }
 0x1d6   : > { %v1077_v36 = vmax.f32 %v1075_v19, %v1076_v35 }
 0x1d7   : > { %v1108_v37 = vmax.f32 %v1100_v54, 0.0 }
 0x1d8   : > { %v1078_v41 = vrot.slane %v1077_v36, 2 }
 0x1d9   : > { %v1137_v13 = vrot.slane %v1108_v37, 3 }
 0x1da   : > { %v999_v14 = vld.sshfl [vmem:[#allocation1 + $0x20] sm:$0xff pattern:$0x75316420]  ;;  %v1079_v42 = vmax.f32 %v1077_v36, %v1078_v41 }
 0x1db   : > { %v1082_v6 = vsel %vm1017_vm4, %v999_v14, -inf  ;;  %v1139_v25 = vsel %vm1138_vm10, %v1137_v13, %v1136_v24 }
 0x1dc   : > { %v1080_v18 = vrot.slane %v1079_v42, 1  ;;  %v1084_v49 = vmax.f32 %v1082_v6, %v1083_v48 }
 0x1de   : > { %v1085_v57 = vrot.slane %v1084_v49, 4  ;;  %v1081_v52 = vmax.f32 %v1079_v42, %v1080_v18 }
 0x1e0   : > { %v1086_v31 = vmax.f32 %v1084_v49, %v1085_v57  ;;  %v1101_v27 = vadd.f32 %v2055_v26, %v1081_v52 }
 0x1e2   : > { %v1087_v22 = vrot.slane %v1086_v31, 2  ;;  %v1109_v5 = vmax.f32 %v1101_v27, 0.0 }
 0x1e4   : > { %v1088_v62 = vmax.f32 %v1086_v31, %v1087_v22  ;;  %v1140_v16 = vrot.slane %v1109_v5, 2 }
 0x1e6   : > { %v1089_v3 = vrot.slane %v1088_v62, 1  ;;  %v1142_v8 = vsel %vm1141_vm11, %v1140_v16, %v1139_v25 }
 0x1e8   : > { %v1090_v10 = vmax.f32 %v1088_v62, %v1089_v3 }
 0x1ea   : > { %v1102_v12 = vadd.f32 %v2055_v26, %v1090_v10  ;;  %v1336_v26 = vld [vmem:[%s2129_s4] ss:$0 sm:$0xff] }
 0x1ec   : > { %v1110_v20 = vmax.f32 %v1102_v12, 0.0 }
 0x1ee   : > { %v1143_v51 = vrot.slane %v1110_v20, 1 }
 0x1f0   : > { %v1145_v9 = vsel %vm1144_vm12, %v1143_v51, %v1142_v8 }
 0x1f1   : > { %1254 = vmatmul.msk.f32.vlgmr.msra.gmra.mxu2 %vm1017_vm4, %v1145_v9 }
 0x274   : > { %v1169_v56 = vpop.f32.mrf.mxu2 }
 0x275   : > { %v1170_v1 = vadd.f32 %v1336_v26, %v1169_v56 }
 0x277   : > { %1173 = vst.msk [vmem:[%s246_s25] sm:$0xff] %vm1172_vm13, %v1170_v1 }
 0x278 PF: > { %p15_p7 = scmp.ge.s32.totalorder %s1458_s23, 4   ;;  %s2135_s18 = smov %s1393_s19 }
 0x279   : > { %s2136_s19 = smov %s1397_s20  ;;  %s2137_s20 = smov %s1468_s26 }
 0x27a   : > { %s2138_s21 = smov %s1458_s23  ;;  %17 = sbr.rel (!%p15_p7) target bundleno = 3 (0x3), region = 85 }
 0x27f   :  { %1193 = vsyncpa [#allocation3], 1 }
 0x280   :  { %1195 = vsyncpa [#allocation3 + $0x1], 1 }

</bundles_post_ra>
